<compile_context>
chip_gen: v7x
topology: tpu7x:2x2x1
jax: 0.10.0
libtpu: 0.0.40
codegen_flags: <defaults>
</compile_context>

<pallas_src>
import jax
import jax.numpy as jnp
from jax import lax
from jax.experimental import pallas as pl
from jax.experimental.pallas import tpu as pltpu

EPS = 1e-5
MAX_TILE_ROWS = 512     # fixed VMEM-budgeted row tile (fits v5e/v6e/v7x budgets)
ROW_MULT = 16           # bf16 sublane packing -> row tiles multiple of 16


# --------------------------- Pallas kernels ---------------------------------

def conv_prelu_kernel(patch_ref, w_ref, alpha_ref, out_ref):
    """3x3 conv as im2col matmul (bf16 in, f32 acc) -> per-channel PReLU."""
    a = jnp.dot(patch_ref[...], w_ref[...], preferred_element_type=jnp.float32)
    out_ref[...] = jnp.where(a > 0, a, alpha_ref[...] * a).astype(out_ref.dtype)


def conv_bias_proj_add_kernel(patch_ref, w_ref, b_ref, xs_ref, ws_ref, bs_ref,
                              out_ref):
    """Strided 3x3 conv (BN2 folded into w/b) + projection shortcut
    (1x1 conv with its BN folded into ws/bs), residual add."""
    r = jnp.dot(patch_ref[...], w_ref[...], preferred_element_type=jnp.float32)
    r = r + b_ref[...]
    s = jnp.dot(xs_ref[...], ws_ref[...], preferred_element_type=jnp.float32)
    s = s + bs_ref[...]
    out_ref[...] = (r + s).astype(out_ref.dtype)


def conv_bias_identity_add_kernel(patch_ref, w_ref, b_ref, xs_ref, out_ref):
    """Strided 3x3 conv (BN2 folded) + identity shortcut (MaxPool2d(1, stride)
    == strided subsample): no shortcut matmul, just an f32 add."""
    r = jnp.dot(patch_ref[...], w_ref[...], preferred_element_type=jnp.float32)
    r = r + b_ref[...]
    out_ref[...] = (r + xs_ref[...]).astype(out_ref.dtype)


# ----------------------------- helpers ---------------------------------------

def _round_up(x, m):
    return (x + m - 1) // m * m


def _pick_tile(p):
    return min(MAX_TILE_ROWS, _round_up(p, ROW_MULT))


def _pad_rows(a, rows):
    p = a.shape[0]
    if p == rows:
        return a
    return jnp.pad(a, ((0, rows - p),) + ((0, 0),) * (a.ndim - 1))


def bn_fold(bn):
    gamma, beta, mean, var = bn
    scale = gamma / jnp.sqrt(var + EPS)
    shift = beta - mean * scale
    return scale, shift


def im2col(x, kh, kw, stride, pad):
    """x: (N,H,W,C) -> (N*Ho*Wo, kh*kw*C), tap-major / channel-fastest."""
    N, H, W, C = x.shape
    xp = jnp.pad(x, ((0, 0), (pad, pad), (pad, pad), (0, 0)))
    Ho = (H + 2 * pad - kh) // stride + 1
    Wo = (W + 2 * pad - kw) // stride + 1
    cols = []
    for dy in range(kh):
        for dx in range(kw):
            cols.append(xp[:, dy:dy + stride * (Ho - 1) + 1:stride,
                           dx:dx + stride * (Wo - 1) + 1:stride, :])
    patches = jnp.stack(cols, axis=3)                    # (N, Ho, Wo, kh*kw, C)
    return patches.reshape(N * Ho * Wo, kh * kw * C), (N, Ho, Wo)


# --------------------------- pallas_call wrappers ----------------------------

def _stage1(patches, w, alpha):
    P, K = patches.shape
    D = w.shape[1]
    tile = _pick_tile(P)
    Pp = _round_up(P, tile)
    patches = _pad_rows(patches, Pp)
    out = pl.pallas_call(
        conv_prelu_kernel,
        out_shape=jax.ShapeDtypeStruct((Pp, D), jnp.bfloat16),
        grid=(Pp // tile,),
        in_specs=[
            pl.BlockSpec((tile, K), lambda i: (i, 0)),
            pl.BlockSpec((K, D), lambda i: (0, 0)),
            pl.BlockSpec((1, D), lambda i: (0, 0)),
        ],
        out_specs=pl.BlockSpec((tile, D), lambda i: (i, 0)),
        compiler_params=pltpu.CompilerParams(dimension_semantics=("parallel",)),
    )(patches, w, alpha)
    return out[:P]


def _stage2_proj(patches, w, b, xs, ws, bs):
    P, K = patches.shape
    D = w.shape[1]
    Cin = xs.shape[1]
    tile = _pick_tile(P)
    Pp = _round_up(P, tile)
    patches = _pad_rows(patches, Pp)
    xs = _pad_rows(xs, Pp)
    out = pl.pallas_call(
        conv_bias_proj_add_kernel,
        out_shape=jax.ShapeDtypeStruct((Pp, D), jnp.float32),
        grid=(Pp // tile,),
        in_specs=[
            pl.BlockSpec((tile, K), lambda i: (i, 0)),
            pl.BlockSpec((K, D), lambda i: (0, 0)),
            pl.BlockSpec((1, D), lambda i: (0, 0)),
            pl.BlockSpec((tile, Cin), lambda i: (i, 0)),
            pl.BlockSpec((Cin, D), lambda i: (0, 0)),
            pl.BlockSpec((1, D), lambda i: (0, 0)),
        ],
        out_specs=pl.BlockSpec((tile, D), lambda i: (i, 0)),
        compiler_params=pltpu.CompilerParams(dimension_semantics=("parallel",)),
    )(patches, w, b, xs, ws, bs)
    return out[:P]


def _stage2_identity(patches, w, b, xs):
    P, K = patches.shape
    D = w.shape[1]
    tile = _pick_tile(P)
    Pp = _round_up(P, tile)
    patches = _pad_rows(patches, Pp)
    xs = _pad_rows(xs, Pp)
    out = pl.pallas_call(
        conv_bias_identity_add_kernel,
        out_shape=jax.ShapeDtypeStruct((Pp, D), jnp.float32),
        grid=(Pp // tile,),
        in_specs=[
            pl.BlockSpec((tile, K), lambda i: (i, 0)),
            pl.BlockSpec((K, D), lambda i: (0, 0)),
            pl.BlockSpec((1, D), lambda i: (0, 0)),
            pl.BlockSpec((tile, D), lambda i: (i, 0)),
        ],
        out_specs=pl.BlockSpec((tile, D), lambda i: (i, 0)),
        compiler_params=pltpu.CompilerParams(dimension_semantics=("parallel",)),
    )(patches, w, b, xs)
    return out[:P]


# ------------------------------ forward ---------------------------------------

def bottleneck_ir_forward(x_nchw, params, in_channel, depth, stride):
    N, C, H, W = x_nchw.shape
    assert C == in_channel
    x = jnp.transpose(x_nchw, (0, 2, 3, 1)).astype(jnp.float32)       # NHWC

    # BN1 applied to the un-expanded input BEFORE zero padding (correctness:
    # the zero halo of the conv must stay zero after the affine).
    scale1, shift1 = bn_fold(params['bn1'])
    t = (x * scale1 + shift1).astype(jnp.bfloat16)

    # stage 1: Conv3x3(s=1, p=1) -> PReLU
    patches1, (_, H1, W1) = im2col(t, 3, 3, 1, 1)                      # bf16
    w1 = jnp.transpose(params['w1'], (2, 3, 1, 0)).reshape(9 * in_channel, depth)
    r1 = _stage1(patches1, w1.astype(jnp.bfloat16),
                 params['alpha'][None, :].astype(jnp.float32))          # bf16
    r1 = r1.reshape(N, H1, W1, depth)

    # stage 2: Conv3x3(stride, p=1) with BN2 folded into weights + bias,
    # fused with the shortcut branch.
    patches2, (_, Ho, Wo) = im2col(r1, 3, 3, stride, 1)                 # bf16
    scale2, shift2 = bn_fold(params['bn2'])
    w2 = jnp.transpose(params['w2'], (2, 3, 1, 0)).reshape(9 * depth, depth)
    w2 = (w2 * scale2[None, :]).astype(jnp.bfloat16)
    b2 = shift2[None, :].astype(jnp.float32)

    # shortcut sampling: both MaxPool2d(1, stride) and Conv1x1(stride) read
    # the ORIGINAL x at x[::s, ::s].
    xs = x[:, ::stride, ::stride, :].reshape(N * Ho * Wo, in_channel)
    if in_channel == depth:
        out = _stage2_identity(patches2, w2, b2, xs)                    # xs f32
    else:
        s_scale, s_shift = bn_fold(params['bns'])
        ws = params['ws'].reshape(depth, in_channel).T                  # (Cin, D)
        ws = (ws * s_scale[None, :]).astype(jnp.bfloat16)
        bs = s_shift[None, :].astype(jnp.float32)
        out = _stage2_proj(patches2, w2, b2, xs.astype(jnp.bfloat16), ws, bs)

    out = out.reshape(N, Ho, Wo, depth)
    return jnp.transpose(out, (0, 3, 1, 2))                             # NCHW


# --------------------------- pure-JAX reference -------------------------------

def reference_forward(x_nchw, params, in_channel, depth, stride):
    x = jnp.transpose(x_nchw, (0, 2, 3, 1)).astype(jnp.float32)
    dn = ('NHWC', 'HWIO', 'NHWC')
    scale1, shift1 = bn_fold(params['bn1'])
    t = x * scale1 + shift1
    w1 = jnp.transpose(params['w1'], (2, 3, 1, 0))
    r = lax.conv_general_dilated(t, w1, (1, 1), ((1, 1), (1, 1)),
                                 dimension_numbers=dn, precision=lax.Precision.HIGHEST)
    r = jnp.where(r > 0, r, params['alpha'] * r)
    w2 = jnp.transpose(params['w2'], (2, 3, 1, 0))
    r = lax.conv_general_dilated(r, w2, (stride, stride), ((1, 1), (1, 1)),
                                 dimension_numbers=dn, precision=lax.Precision.HIGHEST)
    scale2, shift2 = bn_fold(params['bn2'])
    r = r * scale2 + shift2
    if in_channel == depth:
        sc = x[:, ::stride, ::stride, :]
    else:
        ws = jnp.transpose(params['ws'], (2, 3, 1, 0))
        sc = lax.conv_general_dilated(x, ws, (stride, stride), ((0, 0), (0, 0)),
                                      dimension_numbers=dn, precision=lax.Precision.HIGHEST)
        s_scale, s_shift = bn_fold(params['bns'])
        sc = sc * s_scale + s_shift
    return jnp.transpose(r + sc, (0, 3, 1, 2))


# ------------------------------- params ---------------------------------------

def init_params(key, in_channel, depth):
    ks = jax.random.split(key, 6)

    def nrm(k, shape, scl):
        return scl * jax.random.normal(k, shape, jnp.float32)

    def bn(k, c):
        k1, k2, k3, k4 = jax.random.split(k, 4)
        gamma = 1.0 + 0.1 * jax.random.normal(k1, (c,), jnp.float32)
        beta = 0.1 * jax.random.normal(k2, (c,), jnp.float32)
        mean = 0.1 * jax.random.normal(k3, (c,), jnp.float32)
        var = 0.5 + 0.5 * jnp.abs(jax.random.normal(k4, (c,), jnp.float32))
        return gamma, beta, mean, var

    return {
        'w1': nrm(ks[0], (depth, in_channel, 3, 3), 0.2),   # OIHW (torch layout)
        'w2': nrm(ks[1], (depth, depth, 3, 3), 0.2),
        'alpha': jnp.full((depth,), 0.25, jnp.float32),     # PReLU default init
        'bn1': bn(ks[2], in_channel),
        'bn2': bn(ks[3], depth),
        'ws': nrm(ks[4], (depth, in_channel, 1, 1), 0.2),
        'bns': bn(ks[5], depth),
    }


def _run_case(key, N, Cin, H, W, depth, stride):
    kx, kp = jax.random.split(key)
    x = jax.random.normal(kx, (N, Cin, H, W), jnp.float32)
    params = init_params(kp, Cin, depth)
    out = jax.block_until_ready(bottleneck_ir_forward(x, params, Cin, depth, stride))
    ref = reference_forward(x, params, Cin, depth, stride)
    Ho = (H + 2 - 3) // stride + 1
    Wo = (W + 2 - 3) // stride + 1
    assert out.shape == (N, depth, Ho, Wo), out.shape
    # bf16 MXU operands (f32 accumulation) -> slightly looser tolerance than f32.
    assert jnp.allclose(out, ref, atol=5e-2, rtol=5e-2), \
        float(jnp.max(jnp.abs(out - ref)))


if __name__ == "__main__":
    key = jax.random.PRNGKey(0)
    k1, k2 = jax.random.split(key)
    # projection shortcut (in_channel != depth), strided
    _run_case(k1, 2, 4, 16, 16, 8, 2)
    # identity shortcut (in_channel == depth)
    _run_case(k2, 2, 8, 16, 16, 8, 1)
    print("KERNEL_OK")
</pallas_src>

<mosaic_0001>
module attributes {stable_mosaic.version = 11 : i64} {
  func.func @conv_prelu_kernel(%arg0: i32, %arg1: memref<512x36xbf16, #tpu.memory_space<vmem>>, %arg2: memref<36x8xbf16, #tpu.memory_space<vmem>>, %arg3: memref<1x8xf32, #tpu.memory_space<vmem>>, %arg4: memref<512x8xbf16, #tpu.memory_space<vmem>>) attributes {dimension_semantics = [#tpu.dimension_semantics<parallel>], iteration_bounds = array<i64: 1>, scalar_prefetch = 0 : i64, scratch_operands = 0 : i64, tpu.core_type = #tpu.core_type<tc>, window_params = [{transform_indices = @transform_0, window_bounds = array<i64: 512, 36>}, {pipeline_mode = #tpu.pipeline_mode<synchronous>, transform_indices = @transform_1, window_bounds = array<i64: 36, 8>}, {pipeline_mode = #tpu.pipeline_mode<synchronous>, transform_indices = @transform_2, window_bounds = array<i64: 1, 8>}, {transform_indices = @transform_3, window_bounds = array<i64: 512, 8>}]} {
    %c0 = arith.constant 0 : index
    %c0_0 = arith.constant 0 : index
    %0 = vector.load %arg1[%c0, %c0_0] : memref<512x36xbf16, #tpu.memory_space<vmem>>, vector<512x36xbf16>
    %c0_1 = arith.constant 0 : index
    %c0_2 = arith.constant 0 : index
    %1 = vector.load %arg2[%c0_1, %c0_2] : memref<36x8xbf16, #tpu.memory_space<vmem>>, vector<36x8xbf16>
    %cst = arith.constant dense<0.000000e+00> : vector<512x8xf32>
    %2 = tpu.matmul %0, %1, %cst {dimension_numbers = #tpu.dot_dimension_numbers<[1], [0], [0], [1], [0, 0, 1, 1], [], []>} : vector<512x36xbf16>, vector<36x8xbf16>, vector<512x8xf32> -> vector<512x8xf32>
    %cst_3 = arith.constant 0.000000e+00 : f32
    %3 = vector.broadcast %cst_3 : f32 to vector<512x8xf32>
    %4 = arith.cmpf ogt, %2, %3 : vector<512x8xf32>
    %c0_4 = arith.constant 0 : index
    %c0_5 = arith.constant 0 : index
    %5 = vector.load %arg3[%c0_4, %c0_5] : memref<1x8xf32, #tpu.memory_space<vmem>>, vector<1x8xf32>
    %6 = vector.broadcast %5 : vector<1x8xf32> to vector<512x8xf32>
    %7 = arith.mulf %6, %2 : vector<512x8xf32>
    %8 = arith.select %4, %2, %7 : vector<512x8xi1>, vector<512x8xf32>
    %9 = arith.truncf %8 : vector<512x8xf32> to vector<512x8xbf16>
    %c0_6 = arith.constant 0 : index
    %c0_7 = arith.constant 0 : index
    %10 = vector.load %arg4[%c0_6, %c0_7] : memref<512x8xbf16, #tpu.memory_space<vmem>>, vector<512x8xbf16>
    tpu.vector_store %arg4[%c0_6, %c0_7], %9 {strides = array<i32>} : memref<512x8xbf16, #tpu.memory_space<vmem>>, vector<512x8xbf16>,
    return
  }
  func.func @transform_0(%arg0: i32) -> (i32, i32) {
    %c0_i32 = arith.constant 0 : i32
    %c0_i32_0 = arith.constant 0 : i32
    return %arg0, %c0_i32 : i32, i32
  }
  func.func @transform_1(%arg0: i32) -> (i32, i32) {
    %c0_i32 = arith.constant 0 : i32
    %c0_i32_0 = arith.constant 0 : i32
    %c0_i32_1 = arith.constant 0 : i32
    return %c0_i32, %c0_i32_0 : i32, i32
  }
  func.func @transform_2(%arg0: i32) -> (i32, i32) {
    %c0_i32 = arith.constant 0 : i32
    %c0_i32_0 = arith.constant 0 : i32
    %c0_i32_1 = arith.constant 0 : i32
    return %c0_i32, %c0_i32_0 : i32, i32
  }
  func.func @transform_3(%arg0: i32) -> (i32, i32) {
    %c0_i32 = arith.constant 0 : i32
    %c0_i32_0 = arith.constant 0 : i32
    return %arg0, %c0_i32 : i32, i32
  }
}

</mosaic_0001>

<bundles_post_ra>
// kernel: tpu_custom_call.1
= control target key start
LH: loop header
LB: loop body
LE: loop exit
PB: predicated region body
PF: predicated region fallthrough
CT: control target
= control target key end

     0   :  { %vm259_vm0 = vcmask 293888   ;;  %vm356_vm1 = vcmask 1041408   ;;  %vm1104_vm2 = vcmask 60416   ;;  %s2013_s1 = inlined_call_operand.vmem [shape: bf16[36,8], index: 1, kind: input, shape index: {}]   ;;  %s2014_s0 = inlined_call_operand.vmem [shape: bf16[512,36], index: 0, kind: input, shape index: {}]   ;;  %s2015_s2 = inlined_call_operand.vmem [shape: f32[1,8], index: 2, kind: input, shape index: {}]   ;;  %s2016_s3 = inlined_call_operand.vmem [shape: bf16[512,8], index: 3, kind: output, shape index: {}]  }
   0x1   :  { %v1482_v0 = vld [vmem:[%s2013_s1] sm:$0xff]   ;;  %v1483_v1 = vld [vmem:[%s2013_s1 + $0x8] sm:$0xff]   ;;  %v1484_v2 = vld [vmem:[%s2013_s1 + $0x10] ss:$0 sps:$4 sm:$0x33]  }
   0x2   :  { %1404 = vmatprep.subr.bf16.mxu0 %v1482_v0  ;;  %1474 = vmatprep.subr.bf16.mxu1 %v1482_v0  ;;  %v1485_v3 = vld [vmem:[%s2014_s0] sm:$0xff]   ;;  %v358_v5 = vsel %vm356_vm1, %v1484_v2, 0  ;;  %v1487_v6 = vld [vmem:[%s2014_s0 + $0x8] sm:$0xff]   ;;  %v1489_v8 = vld [vmem:[%s2014_s0 + $0x10] sm:$0xff]  }
   0x3   :  { %1405 = vmatpush3.bf16.msra.mxu0 %v1482_v0  ;;  %1477 = vmatpush3.bf16.msra.mxu1 %v1482_v0  ;;  %v1486_v4 = vld [vmem:[%s2014_s0 + $0x80] sm:$0xff]   ;;  %v1488_v7 = vld [vmem:[%s2014_s0 + $0x88] sm:$0xff]   ;;  %v1490_v9 = vld [vmem:[%s2014_s0 + $0x90] sm:$0xff]  }
   0x4   :  { %1406 = vmatprep.subr.bf16.mxu0 %v1483_v1  ;;  %1475 = vmatprep.subr.bf16.mxu1 %v1483_v1  ;;  %v1491_v10 = vld [vmem:[%s2014_s0 + $0x18] sm:$0xff]   ;;  %v1493_v12 = vld [vmem:[%s2014_s0 + $0x20] sm:$0xff]   ;;  %v1495_v14 = vld [vmem:[%s2014_s0 + $0x28] sm:$0xff]  }
   0x5   :  { %1410 = vmatprep.mubr.msk.bf16.mxu0 %vm259_vm0, %v1485_v3  ;;  %1442 = vmatprep.mubr.msk.bf16.mxu1 %vm259_vm0, %v1486_v4  ;;  %v1492_v11 = vld [vmem:[%s2014_s0 + $0x98] sm:$0xff]   ;;  %v1494_v13 = vld [vmem:[%s2014_s0 + $0xa0] sm:$0xff]   ;;  %v1496_v15 = vld [vmem:[%s2014_s0 + $0xa8] sm:$0xff]  }
   0x6   :  { %v1497_v16 = vld [vmem:[%s2014_s0 + $0x30] sm:$0xff]   ;;  %v1499_v18 = vld [vmem:[%s2014_s0 + $0x38] sm:$0xff]   ;;  %v1501_v20 = vld [vmem:[%s2014_s0 + $0x40] sm:$0xff]  }
   0x7   :  { %1407 = vmatpush3.bf16.msra.mxu0 %v1483_v1  ;;  %1478 = vmatpush3.bf16.msra.mxu1 %v1483_v1  ;;  %v1498_v17 = vld [vmem:[%s2014_s0 + $0xb0] sm:$0xff]   ;;  %v1500_v19 = vld [vmem:[%s2014_s0 + $0xb8] sm:$0xff]   ;;  %v1502_v21 = vld [vmem:[%s2014_s0 + $0xc0] sm:$0xff]  }
   0x8   :  { %1480 = vmatprep.subr.msk.bf16.mxu0 %vm356_vm1, %v1484_v2  ;;  %1481 = vmatprep.subr.msk.bf16.mxu1 %vm356_vm1, %v1484_v2  ;;  %v1503_v22 = vld [vmem:[%s2014_s0 + $0x48] sm:$0xff]   ;;  %v1505_v24 = vld [vmem:[%s2014_s0 + $0x50] sm:$0xff]   ;;  %v1507_v26 = vld [vmem:[%s2014_s0 + $0x58] sm:$0xff]  }
   0x9   :  { %v1504_v23 = vld [vmem:[%s2014_s0 + $0xc8] sm:$0xff]   ;;  %v1506_v25 = vld [vmem:[%s2014_s0 + $0xd0] sm:$0xff]   ;;  %v1508_v27 = vld [vmem:[%s2014_s0 + $0xd8] sm:$0xff]  }
   0xa   :  { %v1509_v28 = vld [vmem:[%s2014_s0 + $0x60] sm:$0xff]   ;;  %v1511_v30 = vld [vmem:[%s2014_s0 + $0x68] sm:$0xff]   ;;  %v1513_v32 = vld [vmem:[%s2014_s0 + $0x70] sm:$0xff]  }
   0xb   :  { %1409 = vmatpush3.bf16.msra.mxu0 %v358_v5  ;;  %1479 = vmatpush3.bf16.msra.mxu1 %v358_v5  ;;  %v1510_v29 = vld [vmem:[%s2014_s0 + $0xe0] sm:$0xff]   ;;  %v1512_v31 = vld [vmem:[%s2014_s0 + $0xe8] sm:$0xff]   ;;  %v1514_v33 = vld [vmem:[%s2014_s0 + $0xf0] sm:$0xff]  }
   0xc   :  { %v1515_v34 = vld [vmem:[%s2014_s0 + $0x78] sm:$0xff]   ;;  %v1677_v36 = vld [vmem:[%s2015_s2] ss:$0 sm:$0xff] }
   0xd   :  { %v1516_v35 = vld [vmem:[%s2014_s0 + $0xf8] sm:$0xff]  }
   0xe   :  { %1411 = vmatmul.mubr.msk.bf16.vlgmr.msra.gmra.mrb[0].mxu0 %vm259_vm0, %v1487_v6  ;;  %1443 = vmatmul.mubr.msk.bf16.vlgmr.msra.gmra.mrb[0].mxu1 %vm259_vm0, %v1488_v7 }
   0xf   :  { %1414 = vmatprep.mubr.msk.bf16.mxu0 %vm259_vm0, %v1489_v8  ;;  %1446 = vmatprep.mubr.msk.bf16.mxu1 %vm259_vm0, %v1490_v9 }
  0x16   :  { %1415 = vmatmul.mubr.msk.bf16.gmra.mrb[4].mxu0 %vm259_vm0, %v1491_v10  ;;  %1447 = vmatmul.mubr.msk.bf16.gmra.mrb[4].mxu1 %vm259_vm0, %v1492_v11 }
  0x17   :  { %1418 = vmatprep.mubr.msk.bf16.mxu0 %vm259_vm0, %v1493_v12  ;;  %1450 = vmatprep.mubr.msk.bf16.mxu1 %vm259_vm0, %v1494_v13 }
  0x1e   :  { %1419 = vmatmul.mubr.msk.bf16.gmra.mrb[8].mxu0 %vm259_vm0, %v1495_v14  ;;  %1451 = vmatmul.mubr.msk.bf16.gmra.mrb[8].mxu1 %vm259_vm0, %v1496_v15 }
  0x1f   :  { %1422 = vmatprep.mubr.msk.bf16.mxu0 %vm259_vm0, %v1497_v16  ;;  %1454 = vmatprep.mubr.msk.bf16.mxu1 %vm259_vm0, %v1498_v17 }
  0x26   :  { %1423 = vmatmul.mubr.msk.bf16.gmra.mrb[12].mxu0 %vm259_vm0, %v1499_v18  ;;  %1455 = vmatmul.mubr.msk.bf16.gmra.mrb[12].mxu1 %vm259_vm0, %v1500_v19 }
  0x27   :  { %1426 = vmatprep.mubr.msk.bf16.mxu0 %vm259_vm0, %v1501_v20  ;;  %1458 = vmatprep.mubr.msk.bf16.mxu1 %vm259_vm0, %v1502_v21 }
  0x2e   :  { %1427 = vmatmul.mubr.msk.bf16.gmra.mrb[16].mxu0 %vm259_vm0, %v1503_v22  ;;  %1459 = vmatmul.mubr.msk.bf16.gmra.mrb[16].mxu1 %vm259_vm0, %v1504_v23 }
  0x2f   :  { %1430 = vmatprep.mubr.msk.bf16.mxu0 %vm259_vm0, %v1505_v24  ;;  %1462 = vmatprep.mubr.msk.bf16.mxu1 %vm259_vm0, %v1506_v25 }
  0x36   :  { %1431 = vmatmul.mubr.msk.bf16.gmra.mrb[20].mxu0 %vm259_vm0, %v1507_v26  ;;  %1463 = vmatmul.mubr.msk.bf16.gmra.mrb[20].mxu1 %vm259_vm0, %v1508_v27 }
  0x37   :  { %1434 = vmatprep.mubr.msk.bf16.mxu0 %vm259_vm0, %v1509_v28  ;;  %1466 = vmatprep.mubr.msk.bf16.mxu1 %vm259_vm0, %v1510_v29 }
  0x3e   :  { %1435 = vmatmul.mubr.msk.bf16.gmra.mrb[24].mxu0 %vm259_vm0, %v1511_v30  ;;  %1467 = vmatmul.mubr.msk.bf16.gmra.mrb[24].mxu1 %vm259_vm0, %v1512_v31 }
  0x3f   :  { %1438 = vmatprep.mubr.msk.bf16.mxu0 %vm259_vm0, %v1513_v32  ;;  %1470 = vmatprep.mubr.msk.bf16.mxu1 %vm259_vm0, %v1514_v33 }
  0x46   :  { %1439 = vmatmul.mubr.msk.bf16.gmra.mrb[28].mxu0 %vm259_vm0, %v1515_v34  ;;  %1471 = vmatmul.mubr.msk.bf16.gmra.mrb[28].mxu1 %vm259_vm0, %v1516_v35 }
  0xe1   :  { %v1412_v37 = vpop.f32.mrb[0].mxu0  ;;  %v1444_v38 = vpop.f32.mrb[0].mxu1 }
  0xe2   :  { %vm651_vm3 = vcmp.gt.f32.partialorder %v1412_v37, 0.0  ;;  %v722_v39 = vmul.f32 %v1412_v37, %v1677_v36  ;;  %vm683_vm4 = vcmp.gt.f32.partialorder %v1444_v38, 0.0  ;;  %v754_v40 = vmul.f32 %v1444_v38, %v1677_v36  ;;  %v394_v41 = vpop.f32.mrb[1].mxu0  ;;  %v522_v42 = vpop.f32.mrb[1].mxu1 }
  0xe3   :  { %vm649_vm5 = vcmp.gt.f32.partialorder %v394_v41, 0.0  ;;  %v720_v43 = vmul.f32 %v1677_v36, %v394_v41  ;;  %vm681_vm6 = vcmp.gt.f32.partialorder %v522_v42, 0.0  ;;  %v752_v44 = vmul.f32 %v1677_v36, %v522_v42  ;;  %v1413_v45 = vpop.f32.mrb[2].mxu0  ;;  %v1445_v46 = vpop.f32.mrb[2].mxu1 }
  0xe4   :  { %v786_v47 = vsel %vm651_vm3, %v1412_v37, %v722_v39  ;;  %v818_v48 = vsel %vm683_vm4, %v1444_v38, %v754_v40  ;;  %vm652_vm7 = vcmp.gt.f32.partialorder %v1413_v45, 0.0  ;;  %v723_v49 = vmul.f32 %v1413_v45, %v1677_v36  ;;  %v397_v50 = vpop.f32.mrb[3].mxu0  ;;  %v525_v51 = vpop.f32.mrb[3].mxu1 }
  0xe5   :  { %v1307_v52 = vpack.c.bf16 %v786_v47, %v786_v47  ;;  %v1339_v53 = vpack.c.bf16 %v818_v48, %v818_v48  ;;  %v784_v54 = vsel %vm649_vm5, %v394_v41, %v720_v43  ;;  %v816_v55 = vsel %vm681_vm6, %v522_v42, %v752_v44 }
  0xe6   :  { %v1305_v56 = vpack.c.bf16 %v784_v54, %v784_v54  ;;  %v1337_v57 = vpack.c.bf16 %v816_v55, %v816_v55  ;;  %v787_v58 = vsel %vm652_vm7, %v1413_v45, %v723_v49  ;;  %vm684_vm8 = vcmp.gt.f32.partialorder %v1445_v46, 0.0 }
  0xe7   :  { %1107 = vst.msk [vmem:[%s2016_s3 + $0x8] sm:$0xf] %vm1104_vm2, %v1307_v52  ;;  %1139 = vst.msk [vmem:[%s2016_s3 + $0x88] sm:$0xf] %vm1104_vm2, %v1339_v53  ;;  %v1308_v59 = vpack.c.bf16 %v787_v58, %v787_v58  ;;  %v755_v60 = vmul.f32 %v1445_v46, %v1677_v36  ;;  %vm650_vm9 = vcmp.gt.f32.partialorder %v397_v50, 0.0  ;;  %v721_v61 = vmul.f32 %v1677_v36, %v397_v50 }
  0xe8   :  { %1105 = vst.msk [vmem:[%s2016_s3] sm:$0xf] %vm1104_vm2, %v1305_v56  ;;  %1137 = vst.msk [vmem:[%s2016_s3 + $0x80] sm:$0xf] %vm1104_vm2, %v1337_v57  ;;  %vm682_vm10 = vcmp.gt.f32.partialorder %v525_v51, 0.0  ;;  %v753_v62 = vmul.f32 %v1677_v36, %v525_v51 }
  0xe9   :  { %1108 = vst.msk [vmem:[%s2016_s3 + $0xc] sm:$0xf] %vm1104_vm2, %v1308_v59  ;;  %v819_v63 = vsel %vm684_vm8, %v1445_v46, %v755_v60  ;;  %v785_v0 = vsel %vm650_vm9, %v397_v50, %v721_v61  ;;  %v1416_v1 = vpop.f32.mrb[4].mxu0  ;;  %v1448_v2 = vpop.f32.mrb[4].mxu1 }
  0xea   :  { %v1340_v3 = vpack.c.bf16 %v819_v63, %v819_v63  ;;  %v1306_v4 = vpack.c.bf16 %v785_v0, %v785_v0  ;;  %v817_v5 = vsel %vm682_vm10, %v525_v51, %v753_v62  ;;  %vm655_vm11 = vcmp.gt.f32.partialorder %v1416_v1, 0.0  ;;  %v410_v6 = vpop.f32.mrb[5].mxu0  ;;  %v538_v7 = vpop.f32.mrb[5].mxu1 }
  0xeb   :  { %v1338_v8 = vpack.c.bf16 %v817_v5, %v817_v5  ;;  %v726_v9 = vmul.f32 %v1416_v1, %v1677_v36  ;;  %vm687_vm12 = vcmp.gt.f32.partialorder %v1448_v2, 0.0  ;;  %v758_v10 = vmul.f32 %v1448_v2, %v1677_v36  ;;  %v1417_v11 = vpop.f32.mrb[6].mxu0  ;;  %v1449_v12 = vpop.f32.mrb[6].mxu1 }
  0xec   :  { %1140 = vst.msk [vmem:[%s2016_s3 + $0x8c] sm:$0xf] %vm1104_vm2, %v1340_v3  ;;  %1106 = vst.msk [vmem:[%s2016_s3 + $0x4] sm:$0xf] %vm1104_vm2, %v1306_v4  ;;  %vm653_vm13 = vcmp.gt.f32.partialorder %v410_v6, 0.0  ;;  %v724_v13 = vmul.f32 %v1677_v36, %v410_v6  ;;  %vm685_vm14 = vcmp.gt.f32.partialorder %v538_v7, 0.0  ;;  %v756_v14 = vmul.f32 %v1677_v36, %v538_v7 }
  0xed   :  { %v413_v15 = vpop.f32.mrb[7].mxu0  ;;  %v541_v16 = vpop.f32.mrb[7].mxu1  ;;  %1138 = vst.msk [vmem:[%s2016_s3 + $0x84] sm:$0xf] %vm1104_vm2, %v1338_v8  ;;  %v790_v17 = vsel %vm655_vm11, %v1416_v1, %v726_v9  ;;  %v822_v18 = vsel %vm687_vm12, %v1448_v2, %v758_v10  ;;  %vm656_vm15 = vcmp.gt.f32.partialorder %v1417_v11, 0.0  ;;  %v727_v19 = vmul.f32 %v1417_v11, %v1677_v36 }
  0xee   :  { %v1311_v20 = vpack.c.bf16 %v790_v17, %v790_v17  ;;  %v1343_v21 = vpack.c.bf16 %v822_v18, %v822_v18  ;;  %v788_v22 = vsel %vm653_vm13, %v410_v6, %v724_v13  ;;  %v820_v23 = vsel %vm685_vm14, %v538_v7, %v756_v14 }
  0xef   :  { %v1309_v24 = vpack.c.bf16 %v788_v22, %v788_v22  ;;  %v1341_v25 = vpack.c.bf16 %v820_v23, %v820_v23  ;;  %v791_v26 = vsel %vm656_vm15, %v1417_v11, %v727_v19  ;;  %vm688_vm0 = vcmp.gt.f32.partialorder %v1449_v12, 0.0 }
  0xf0   :  { %1111 = vst.msk [vmem:[%s2016_s3 + $0x18] sm:$0xf] %vm1104_vm2, %v1311_v20  ;;  %1143 = vst.msk [vmem:[%s2016_s3 + $0x98] sm:$0xf] %vm1104_vm2, %v1343_v21  ;;  %v1312_v27 = vpack.c.bf16 %v791_v26, %v791_v26  ;;  %v759_v28 = vmul.f32 %v1449_v12, %v1677_v36  ;;  %vm654_vm1 = vcmp.gt.f32.partialorder %v413_v15, 0.0  ;;  %v725_v29 = vmul.f32 %v1677_v36, %v413_v15 }
  0xf1   :  { %1109 = vst.msk [vmem:[%s2016_s3 + $0x10] sm:$0xf] %vm1104_vm2, %v1309_v24  ;;  %1141 = vst.msk [vmem:[%s2016_s3 + $0x90] sm:$0xf] %vm1104_vm2, %v1341_v25  ;;  %vm686_vm3 = vcmp.gt.f32.partialorder %v541_v16, 0.0  ;;  %v757_v30 = vmul.f32 %v1677_v36, %v541_v16  ;;  %v1420_v31 = vpop.f32.mrb[8].mxu0 }
  0xf2   :  { %v1452_v32 = vpop.f32.mrb[8].mxu1  ;;  %1112 = vst.msk [vmem:[%s2016_s3 + $0x1c] sm:$0xf] %vm1104_vm2, %v1312_v27  ;;  %v823_v33 = vsel %vm688_vm0, %v1449_v12, %v759_v28  ;;  %v789_v34 = vsel %vm654_vm1, %v413_v15, %v725_v29  ;;  %vm659_vm4 = vcmp.gt.f32.partialorder %v1420_v31, 0.0  ;;  %v730_v35 = vmul.f32 %v1420_v31, %v1677_v36  ;;  %v426_v37 = vpop.f32.mrb[9].mxu0 }
  0xf3   :  { %v554_v38 = vpop.f32.mrb[9].mxu1  ;;  %v1344_v39 = vpack.c.bf16 %v823_v33, %v823_v33  ;;  %v1310_v40 = vpack.c.bf16 %v789_v34, %v789_v34  ;;  %v821_v41 = vsel %vm686_vm3, %v541_v16, %v757_v30  ;;  %vm691_vm5 = vcmp.gt.f32.partialorder %v1452_v32, 0.0  ;;  %v1421_v42 = vpop.f32.mrb[10].mxu0 }
  0xf4   :  { %v1453_v43 = vpop.f32.mrb[10].mxu1  ;;  %v1342_v44 = vpack.c.bf16 %v821_v41, %v821_v41  ;;  %v794_v45 = vsel %vm659_vm4, %v1420_v31, %v730_v35  ;;  %v762_v46 = vmul.f32 %v1452_v32, %v1677_v36  ;;  %vm657_vm6 = vcmp.gt.f32.partialorder %v426_v37, 0.0  ;;  %v429_v47 = vpop.f32.mrb[11].mxu0 }
  0xf5   :  { %v557_v48 = vpop.f32.mrb[11].mxu1  ;;  %1144 = vst.msk [vmem:[%s2016_s3 + $0x9c] sm:$0xf] %vm1104_vm2, %v1344_v39  ;;  %1110 = vst.msk [vmem:[%s2016_s3 + $0x14] sm:$0xf] %vm1104_vm2, %v1310_v40  ;;  %v1315_v49 = vpack.c.bf16 %v794_v45, %v794_v45  ;;  %v728_v50 = vmul.f32 %v1677_v36, %v426_v37  ;;  %vm689_vm7 = vcmp.gt.f32.partialorder %v554_v38, 0.0  ;;  %v760_v51 = vmul.f32 %v1677_v36, %v554_v38 }
  0xf6   :  { %1142 = vst.msk [vmem:[%s2016_s3 + $0x94] sm:$0xf] %vm1104_vm2, %v1342_v44  ;;  %v826_v52 = vsel %vm691_vm5, %v1452_v32, %v762_v46  ;;  %vm660_vm8 = vcmp.gt.f32.partialorder %v1421_v42, 0.0  ;;  %v731_v53 = vmul.f32 %v1421_v42, %v1677_v36  ;;  %vm692_vm9 = vcmp.gt.f32.partialorder %v1453_v43, 0.0 }
  0xf7   :  { %1115 = vst.msk [vmem:[%s2016_s3 + $0x28] sm:$0xf] %vm1104_vm2, %v1315_v49  ;;  %v1347_v54 = vpack.c.bf16 %v826_v52, %v826_v52  ;;  %v792_v55 = vsel %vm657_vm6, %v426_v37, %v728_v50  ;;  %v824_v56 = vsel %vm689_vm7, %v554_v38, %v760_v51  ;;  %v763_v57 = vmul.f32 %v1453_v43, %v1677_v36 }
  0xf8   :  { %v1313_v58 = vpack.c.bf16 %v792_v55, %v792_v55  ;;  %v1345_v59 = vpack.c.bf16 %v824_v56, %v824_v56  ;;  %v795_v60 = vsel %vm660_vm8, %v1421_v42, %v731_v53  ;;  %vm658_vm10 = vcmp.gt.f32.partialorder %v429_v47, 0.0 }
  0xf9   :  { %1147 = vst.msk [vmem:[%s2016_s3 + $0xa8] sm:$0xf] %vm1104_vm2, %v1347_v54  ;;  %v1316_v61 = vpack.c.bf16 %v795_v60, %v795_v60  ;;  %v827_v62 = vsel %vm692_vm9, %v1453_v43, %v763_v57  ;;  %v729_v63 = vmul.f32 %v1677_v36, %v429_v47  ;;  %vm690_vm11 = vcmp.gt.f32.partialorder %v557_v48, 0.0  ;;  %v1424_v0 = vpop.f32.mrb[12].mxu0  ;;  %v1456_v1 = vpop.f32.mrb[12].mxu1 }
  0xfa   :  { %1113 = vst.msk [vmem:[%s2016_s3 + $0x20] sm:$0xf] %vm1104_vm2, %v1313_v58  ;;  %1145 = vst.msk [vmem:[%s2016_s3 + $0xa0] sm:$0xf] %vm1104_vm2, %v1345_v59  ;;  %v1348_v2 = vpack.c.bf16 %v827_v62, %v827_v62  ;;  %v761_v3 = vmul.f32 %v1677_v36, %v557_v48  ;;  %vm663_vm12 = vcmp.gt.f32.partialorder %v1424_v0, 0.0  ;;  %v734_v4 = vmul.f32 %v1424_v0, %v1677_v36  ;;  %v442_v5 = vpop.f32.mrb[13].mxu0 }
  0xfb   :  { %v570_v6 = vpop.f32.mrb[13].mxu1  ;;  %1116 = vst.msk [vmem:[%s2016_s3 + $0x2c] sm:$0xf] %vm1104_vm2, %v1316_v61  ;;  %v793_v7 = vsel %vm658_vm10, %v429_v47, %v729_v63  ;;  %vm695_vm13 = vcmp.gt.f32.partialorder %v1456_v1, 0.0  ;;  %v766_v8 = vmul.f32 %v1456_v1, %v1677_v36  ;;  %vm661_vm14 = vcmp.gt.f32.partialorder %v442_v5, 0.0  ;;  %v1425_v9 = vpop.f32.mrb[14].mxu0 }
  0xfc   :  { %v1457_v10 = vpop.f32.mrb[14].mxu1  ;;  %1148 = vst.msk [vmem:[%s2016_s3 + $0xac] sm:$0xf] %vm1104_vm2, %v1348_v2  ;;  %v1314_v11 = vpack.c.bf16 %v793_v7, %v793_v7  ;;  %v825_v12 = vsel %vm690_vm11, %v557_v48, %v761_v3  ;;  %v798_v13 = vsel %vm663_vm12, %v1424_v0, %v734_v4  ;;  %v732_v14 = vmul.f32 %v1677_v36, %v442_v5  ;;  %v445_v15 = vpop.f32.mrb[15].mxu0 }
  0xfd   :  { %v573_v16 = vpop.f32.mrb[15].mxu1  ;;  %v1346_v17 = vpack.c.bf16 %v825_v12, %v825_v12  ;;  %v1319_v18 = vpack.c.bf16 %v798_v13, %v798_v13  ;;  %v830_v19 = vsel %vm695_vm13, %v1456_v1, %v766_v8  ;;  %vm693_vm15 = vcmp.gt.f32.partialorder %v570_v6, 0.0 }
  0xfe   :  { %1114 = vst.msk [vmem:[%s2016_s3 + $0x24] sm:$0xf] %vm1104_vm2, %v1314_v11  ;;  %v1351_v20 = vpack.c.bf16 %v830_v19, %v830_v19  ;;  %v796_v21 = vsel %vm661_vm14, %v442_v5, %v732_v14  ;;  %v764_v22 = vmul.f32 %v1677_v36, %v570_v6  ;;  %vm664_vm0 = vcmp.gt.f32.partialorder %v1425_v9, 0.0 }
  0xff   :  { %1146 = vst.msk [vmem:[%s2016_s3 + $0xa4] sm:$0xf] %vm1104_vm2, %v1346_v17  ;;  %1119 = vst.msk [vmem:[%s2016_s3 + $0x38] sm:$0xf] %vm1104_vm2, %v1319_v18  ;;  %v1317_v23 = vpack.c.bf16 %v796_v21, %v796_v21  ;;  %v735_v24 = vmul.f32 %v1425_v9, %v1677_v36  ;;  %vm696_vm1 = vcmp.gt.f32.partialorder %v1457_v10, 0.0  ;;  %v767_v25 = vmul.f32 %v1457_v10, %v1677_v36 }
 0x100   :  { %1151 = vst.msk [vmem:[%s2016_s3 + $0xb8] sm:$0xf] %vm1104_vm2, %v1351_v20  ;;  %v828_v26 = vsel %vm693_vm15, %v570_v6, %v764_v22  ;;  %vm662_vm3 = vcmp.gt.f32.partialorder %v445_v15, 0.0  ;;  %v733_v27 = vmul.f32 %v1677_v36, %v445_v15  ;;  %vm694_vm4 = vcmp.gt.f32.partialorder %v573_v16, 0.0 }
 0x101   :  { %1117 = vst.msk [vmem:[%s2016_s3 + $0x30] sm:$0xf] %vm1104_vm2, %v1317_v23  ;;  %v1349_v28 = vpack.c.bf16 %v828_v26, %v828_v26  ;;  %v799_v29 = vsel %vm664_vm0, %v1425_v9, %v735_v24  ;;  %v831_v30 = vsel %vm696_vm1, %v1457_v10, %v767_v25  ;;  %v765_v31 = vmul.f32 %v1677_v36, %v573_v16  ;;  %v1428_v32 = vpop.f32.mrb[16].mxu0  ;;  %v1460_v33 = vpop.f32.mrb[16].mxu1 }
 0x102   :  { %v1320_v34 = vpack.c.bf16 %v799_v29, %v799_v29  ;;  %v1352_v35 = vpack.c.bf16 %v831_v30, %v831_v30  ;;  %v797_v37 = vsel %vm662_vm3, %v445_v15, %v733_v27  ;;  %vm667_vm5 = vcmp.gt.f32.partialorder %v1428_v32, 0.0  ;;  %v458_v38 = vpop.f32.mrb[17].mxu0  ;;  %v586_v39 = vpop.f32.mrb[17].mxu1 }
 0x103   :  { %1149 = vst.msk [vmem:[%s2016_s3 + $0xb0] sm:$0xf] %vm1104_vm2, %v1349_v28  ;;  %v1318_v40 = vpack.c.bf16 %v797_v37, %v797_v37  ;;  %v829_v41 = vsel %vm694_vm4, %v573_v16, %v765_v31  ;;  %v738_v42 = vmul.f32 %v1428_v32, %v1677_v36  ;;  %vm699_vm6 = vcmp.gt.f32.partialorder %v1460_v33, 0.0  ;;  %v1429_v43 = vpop.f32.mrb[18].mxu0  ;;  %v1461_v44 = vpop.f32.mrb[18].mxu1 }
 0x104   :  { %1120 = vst.msk [vmem:[%s2016_s3 + $0x3c] sm:$0xf] %vm1104_vm2, %v1320_v34  ;;  %1152 = vst.msk [vmem:[%s2016_s3 + $0xbc] sm:$0xf] %vm1104_vm2, %v1352_v35  ;;  %v1350_v45 = vpack.c.bf16 %v829_v41, %v829_v41  ;;  %v770_v46 = vmul.f32 %v1460_v33, %v1677_v36  ;;  %vm665_vm7 = vcmp.gt.f32.partialorder %v458_v38, 0.0  ;;  %v736_v47 = vmul.f32 %v1677_v36, %v458_v38  ;;  %v461_v48 = vpop.f32.mrb[19].mxu0 }
 0x105   :  { %v589_v49 = vpop.f32.mrb[19].mxu1  ;;  %1118 = vst.msk [vmem:[%s2016_s3 + $0x34] sm:$0xf] %vm1104_vm2, %v1318_v40  ;;  %v802_v50 = vsel %vm667_vm5, %v1428_v32, %v738_v42  ;;  %vm697_vm8 = vcmp.gt.f32.partialorder %v586_v39, 0.0  ;;  %v768_v51 = vmul.f32 %v1677_v36, %v586_v39  ;;  %vm668_vm9 = vcmp.gt.f32.partialorder %v1429_v43, 0.0 }
 0x106   :  { %1150 = vst.msk [vmem:[%s2016_s3 + $0xb4] sm:$0xf] %vm1104_vm2, %v1350_v45  ;;  %v1323_v52 = vpack.c.bf16 %v802_v50, %v802_v50  ;;  %v834_v53 = vsel %vm699_vm6, %v1460_v33, %v770_v46  ;;  %v800_v54 = vsel %vm665_vm7, %v458_v38, %v736_v47  ;;  %v739_v55 = vmul.f32 %v1429_v43, %v1677_v36 }
 0x107   :  { %v1355_v56 = vpack.c.bf16 %v834_v53, %v834_v53  ;;  %v1321_v57 = vpack.c.bf16 %v800_v54, %v800_v54  ;;  %v832_v58 = vsel %vm697_vm8, %v586_v39, %v768_v51  ;;  %vm700_vm10 = vcmp.gt.f32.partialorder %v1461_v44, 0.0 }
 0x108   :  { %1123 = vst.msk [vmem:[%s2016_s3 + $0x48] sm:$0xf] %vm1104_vm2, %v1323_v52  ;;  %v1353_v59 = vpack.c.bf16 %v832_v58, %v832_v58  ;;  %v803_v60 = vsel %vm668_vm9, %v1429_v43, %v739_v55  ;;  %v771_v61 = vmul.f32 %v1461_v44, %v1677_v36  ;;  %vm666_vm11 = vcmp.gt.f32.partialorder %v461_v48, 0.0 }
 0x109   :  { %1155 = vst.msk [vmem:[%s2016_s3 + $0xc8] sm:$0xf] %vm1104_vm2, %v1355_v56  ;;  %1121 = vst.msk [vmem:[%s2016_s3 + $0x40] sm:$0xf] %vm1104_vm2, %v1321_v57  ;;  %v1324_v62 = vpack.c.bf16 %v803_v60, %v803_v60  ;;  %v737_v63 = vmul.f32 %v1677_v36, %v461_v48  ;;  %vm698_vm12 = vcmp.gt.f32.partialorder %v589_v49, 0.0  ;;  %v769_v0 = vmul.f32 %v1677_v36, %v589_v49  ;;  %v1432_v1 = vpop.f32.mrb[20].mxu0 }
 0x10a   :  { %v1464_v2 = vpop.f32.mrb[20].mxu1  ;;  %1153 = vst.msk [vmem:[%s2016_s3 + $0xc0] sm:$0xf] %vm1104_vm2, %v1353_v59  ;;  %v835_v3 = vsel %vm700_vm10, %v1461_v44, %v771_v61  ;;  %vm671_vm13 = vcmp.gt.f32.partialorder %v1432_v1, 0.0  ;;  %v742_v4 = vmul.f32 %v1432_v1, %v1677_v36  ;;  %v474_v5 = vpop.f32.mrb[21].mxu0 }
 0x10b   :  { %vm703_vm14 = vcmp.gt.f32.partialorder %v1464_v2, 0.0  ;;  %v602_v6 = vpop.f32.mrb[21].mxu1  ;;  %1124 = vst.msk [vmem:[%s2016_s3 + $0x4c] sm:$0xf] %vm1104_vm2, %v1324_v62  ;;  %v1356_v7 = vpack.c.bf16 %v835_v3, %v835_v3  ;;  %v801_v8 = vsel %vm666_vm11, %v461_v48, %v737_v63  ;;  %v833_v9 = vsel %vm698_vm12, %v589_v49, %v769_v0  ;;  %v1433_v11 = vpop.f32.mrb[22].mxu0 }
 0x10c   :  { %v774_v10 = vmul.f32 %v1464_v2, %v1677_v36  ;;  %v1465_v12 = vpop.f32.mrb[22].mxu1  ;;  %v1322_v13 = vpack.c.bf16 %v801_v8, %v801_v8  ;;  %v1354_v14 = vpack.c.bf16 %v833_v9, %v833_v9  ;;  %v806_v15 = vsel %vm671_vm13, %v1432_v1, %v742_v4  ;;  %v477_v16 = vpop.f32.mrb[23].mxu0 }
 0x10d   :  { %vm669_vm15 = vcmp.gt.f32.partialorder %v474_v5, 0.0  ;;  %v605_v17 = vpop.f32.mrb[23].mxu1  ;;  %1156 = vst.msk [vmem:[%s2016_s3 + $0xcc] sm:$0xf] %vm1104_vm2, %v1356_v7  ;;  %v1327_v18 = vpack.c.bf16 %v806_v15, %v806_v15  ;;  %v740_v20 = vmul.f32 %v1677_v36, %v474_v5  ;;  %vm701_vm0 = vcmp.gt.f32.partialorder %v602_v6, 0.0 }
 0x10e   :  { %v838_v19 = vsel %vm703_vm14, %v1464_v2, %v774_v10  ;;  %1122 = vst.msk [vmem:[%s2016_s3 + $0x44] sm:$0xf] %vm1104_vm2, %v1322_v13  ;;  %1154 = vst.msk [vmem:[%s2016_s3 + $0xc4] sm:$0xf] %vm1104_vm2, %v1354_v14  ;;  %v772_v22 = vmul.f32 %v1677_v36, %v602_v6  ;;  %vm672_vm1 = vcmp.gt.f32.partialorder %v1433_v11, 0.0  ;;  %v743_v23 = vmul.f32 %v1433_v11, %v1677_v36 }
 0x10f   :  { %v1359_v21 = vpack.c.bf16 %v838_v19, %v838_v19  ;;  %1127 = vst.msk [vmem:[%s2016_s3 + $0x58] sm:$0xf] %vm1104_vm2, %v1327_v18  ;;  %v804_v24 = vsel %vm669_vm15, %v474_v5, %v740_v20  ;;  %vm704_vm3 = vcmp.gt.f32.partialorder %v1465_v12, 0.0  ;;  %v775_v25 = vmul.f32 %v1465_v12, %v1677_v36 }
 0x110   :  { %vm670_vm4 = vcmp.gt.f32.partialorder %v477_v16, 0.0  ;;  %v1325_v26 = vpack.c.bf16 %v804_v24, %v804_v24  ;;  %v836_v27 = vsel %vm701_vm0, %v602_v6, %v772_v22  ;;  %v807_v28 = vsel %vm672_vm1, %v1433_v11, %v743_v23 }
 0x111   :  { %1159 = vst.msk [vmem:[%s2016_s3 + $0xd8] sm:$0xf] %vm1104_vm2, %v1359_v21  ;;  %v741_v29 = vmul.f32 %v1677_v36, %v477_v16  ;;  %v1357_v30 = vpack.c.bf16 %v836_v27, %v836_v27  ;;  %v1328_v31 = vpack.c.bf16 %v807_v28, %v807_v28  ;;  %v839_v32 = vsel %vm704_vm3, %v1465_v12, %v775_v25  ;;  %v1436_v33 = vpop.f32.mrb[24].mxu0  ;;  %v1468_v34 = vpop.f32.mrb[24].mxu1 }
 0x112   :  { %vm702_vm5 = vcmp.gt.f32.partialorder %v605_v17, 0.0  ;;  %1125 = vst.msk [vmem:[%s2016_s3 + $0x50] sm:$0xf] %vm1104_vm2, %v1325_v26  ;;  %v1360_v35 = vpack.c.bf16 %v839_v32, %v839_v32  ;;  %v773_v38 = vmul.f32 %v1677_v36, %v605_v17  ;;  %vm675_vm6 = vcmp.gt.f32.partialorder %v1436_v33, 0.0  ;;  %v490_v39 = vpop.f32.mrb[25].mxu0  ;;  %v618_v40 = vpop.f32.mrb[25].mxu1 }
 0x113   :  { %v805_v37 = vsel %vm670_vm4, %v477_v16, %v741_v29  ;;  %1157 = vst.msk [vmem:[%s2016_s3 + $0xd0] sm:$0xf] %vm1104_vm2, %v1357_v30  ;;  %1128 = vst.msk [vmem:[%s2016_s3 + $0x5c] sm:$0xf] %vm1104_vm2, %v1328_v31  ;;  %v746_v42 = vmul.f32 %v1436_v33, %v1677_v36  ;;  %vm707_vm7 = vcmp.gt.f32.partialorder %v1468_v34, 0.0  ;;  %v778_v43 = vmul.f32 %v1468_v34, %v1677_v36  ;;  %v1437_v44 = vpop.f32.mrb[26].mxu0 }
 0x114   :  { %v1326_v41 = vpack.c.bf16 %v805_v37, %v805_v37  ;;  %v1469_v45 = vpop.f32.mrb[26].mxu1  ;;  %1160 = vst.msk [vmem:[%s2016_s3 + $0xdc] sm:$0xf] %vm1104_vm2, %v1360_v35  ;;  %v837_v46 = vsel %vm702_vm5, %v605_v17, %v773_v38  ;;  %vm673_vm8 = vcmp.gt.f32.partialorder %v490_v39, 0.0  ;;  %v744_v47 = vmul.f32 %v1677_v36, %v490_v39  ;;  %v493_v48 = vpop.f32.mrb[27].mxu0 }
 0x115   :  { %vm705_vm9 = vcmp.gt.f32.partialorder %v618_v40, 0.0  ;;  %v621_v49 = vpop.f32.mrb[27].mxu1  ;;  %v1358_v50 = vpack.c.bf16 %v837_v46, %v837_v46  ;;  %v810_v51 = vsel %vm675_vm6, %v1436_v33, %v746_v42  ;;  %v842_v52 = vsel %vm707_vm7, %v1468_v34, %v778_v43 }
 0x116   :  { %1126 = vst.msk [vmem:[%s2016_s3 + $0x54] sm:$0xf] %vm1104_vm2, %v1326_v41  ;;  %v776_v53 = vmul.f32 %v1677_v36, %v618_v40  ;;  %v1331_v54 = vpack.c.bf16 %v810_v51, %v810_v51  ;;  %v1363_v55 = vpack.c.bf16 %v842_v52, %v842_v52  ;;  %v808_v56 = vsel %vm673_vm8, %v490_v39, %v744_v47 }
 0x117   :  { %vm676_vm10 = vcmp.gt.f32.partialorder %v1437_v44, 0.0  ;;  %1158 = vst.msk [vmem:[%s2016_s3 + $0xd4] sm:$0xf] %vm1104_vm2, %v1358_v50  ;;  %v1329_v57 = vpack.c.bf16 %v808_v56, %v808_v56  ;;  %v747_v59 = vmul.f32 %v1437_v44, %v1677_v36  ;;  %vm708_vm11 = vcmp.gt.f32.partialorder %v1469_v45, 0.0 }
 0x118   :  { %v840_v58 = vsel %vm705_vm9, %v618_v40, %v776_v53  ;;  %1131 = vst.msk [vmem:[%s2016_s3 + $0x68] sm:$0xf] %vm1104_vm2, %v1331_v54  ;;  %1163 = vst.msk [vmem:[%s2016_s3 + $0xe8] sm:$0xf] %vm1104_vm2, %v1363_v55  ;;  %v779_v61 = vmul.f32 %v1469_v45, %v1677_v36  ;;  %vm674_vm12 = vcmp.gt.f32.partialorder %v493_v48, 0.0  ;;  %v745_v62 = vmul.f32 %v1677_v36, %v493_v48 }
 0x119   :  { %v1361_v60 = vpack.c.bf16 %v840_v58, %v840_v58  ;;  %1129 = vst.msk [vmem:[%s2016_s3 + $0x60] sm:$0xf] %vm1104_vm2, %v1329_v57  ;;  %v811_v63 = vsel %vm676_vm10, %v1437_v44, %v747_v59  ;;  %vm706_vm13 = vcmp.gt.f32.partialorder %v621_v49, 0.0  ;;  %v777_v0 = vmul.f32 %v1677_v36, %v621_v49  ;;  %v1440_v1 = vpop.f32.mrb[28].mxu0  ;;  %v1472_v2 = vpop.f32.mrb[28].mxu1 }
 0x11a   :  { %v1332_v3 = vpack.c.bf16 %v811_v63, %v811_v63  ;;  %v843_v4 = vsel %vm708_vm11, %v1469_v45, %v779_v61  ;;  %v809_v5 = vsel %vm674_vm12, %v493_v48, %v745_v62  ;;  %vm679_vm14 = vcmp.gt.f32.partialorder %v1440_v1, 0.0  ;;  %v506_v6 = vpop.f32.mrb[29].mxu0  ;;  %v634_v7 = vpop.f32.mrb[29].mxu1 }
 0x11b   :  { %1161 = vst.msk [vmem:[%s2016_s3 + $0xe0] sm:$0xf] %vm1104_vm2, %v1361_v60  ;;  %v1364_v8 = vpack.c.bf16 %v843_v4, %v843_v4  ;;  %v1330_v9 = vpack.c.bf16 %v809_v5, %v809_v5  ;;  %v841_v10 = vsel %vm706_vm13, %v621_v49, %v777_v0  ;;  %v750_v11 = vmul.f32 %v1440_v1, %v1677_v36  ;;  %v1441_v12 = vpop.f32.mrb[30].mxu0  ;;  %v1473_v13 = vpop.f32.mrb[30].mxu1 }
 0x11c   :  { %1132 = vst.msk [vmem:[%s2016_s3 + $0x6c] sm:$0xf] %vm1104_vm2, %v1332_v3  ;;  %v1362_v14 = vpack.c.bf16 %v841_v10, %v841_v10  ;;  %vm711_vm15 = vcmp.gt.f32.partialorder %v1472_v2, 0.0  ;;  %v782_v15 = vmul.f32 %v1472_v2, %v1677_v36  ;;  %vm677_vm0 = vcmp.gt.f32.partialorder %v506_v6, 0.0  ;;  %v509_v16 = vpop.f32.mrb[31].mxu0  ;;  %v637_v17 = vpop.f32.mrb[31].mxu1 }
 0x11d   :  { %1164 = vst.msk [vmem:[%s2016_s3 + $0xec] sm:$0xf] %vm1104_vm2, %v1364_v8  ;;  %1130 = vst.msk [vmem:[%s2016_s3 + $0x64] sm:$0xf] %vm1104_vm2, %v1330_v9  ;;  %v814_v18 = vsel %vm679_vm14, %v1440_v1, %v750_v11  ;;  %v748_v19 = vmul.f32 %v1677_v36, %v506_v6  ;;  %vm709_vm1 = vcmp.gt.f32.partialorder %v634_v7, 0.0  ;;  %v780_v20 = vmul.f32 %v1677_v36, %v634_v7 }
 0x11e   :  { %1162 = vst.msk [vmem:[%s2016_s3 + $0xe4] sm:$0xf] %vm1104_vm2, %v1362_v14  ;;  %v1335_v21 = vpack.c.bf16 %v814_v18, %v814_v18  ;;  %v846_v22 = vsel %vm711_vm15, %v1472_v2, %v782_v15  ;;  %vm680_vm3 = vcmp.gt.f32.partialorder %v1441_v12, 0.0  ;;  %v751_v23 = vmul.f32 %v1441_v12, %v1677_v36 }
 0x11f   :  { %v1367_v24 = vpack.c.bf16 %v846_v22, %v846_v22  ;;  %v812_v25 = vsel %vm677_vm0, %v506_v6, %v748_v19  ;;  %v844_v26 = vsel %vm709_vm1, %v634_v7, %v780_v20  ;;  %vm712_vm4 = vcmp.gt.f32.partialorder %v1473_v13, 0.0 }
 0x120   :  { %1135 = vst.msk [vmem:[%s2016_s3 + $0x78] sm:$0xf] %vm1104_vm2, %v1335_v21  ;;  %v1333_v27 = vpack.c.bf16 %v812_v25, %v812_v25  ;;  %v1365_v28 = vpack.c.bf16 %v844_v26, %v844_v26  ;;  %v815_v29 = vsel %vm680_vm3, %v1441_v12, %v751_v23  ;;  %v783_v30 = vmul.f32 %v1473_v13, %v1677_v36 }
 0x121   :  { %1167 = vst.msk [vmem:[%s2016_s3 + $0xf8] sm:$0xf] %vm1104_vm2, %v1367_v24  ;;  %v1336_v31 = vpack.c.bf16 %v815_v29, %v815_v29  ;;  %vm678_vm5 = vcmp.gt.f32.partialorder %v509_v16, 0.0  ;;  %v749_v32 = vmul.f32 %v1677_v36, %v509_v16  ;;  %vm710_vm6 = vcmp.gt.f32.partialorder %v637_v17, 0.0 }
 0x122   :  { %1133 = vst.msk [vmem:[%s2016_s3 + $0x70] sm:$0xf] %vm1104_vm2, %v1333_v27  ;;  %1165 = vst.msk [vmem:[%s2016_s3 + $0xf0] sm:$0xf] %vm1104_vm2, %v1365_v28  ;;  %v847_v33 = vsel %vm712_vm4, %v1473_v13, %v783_v30  ;;  %v781_v34 = vmul.f32 %v1677_v36, %v637_v17 }
 0x123   :  { %1136 = vst.msk [vmem:[%s2016_s3 + $0x7c] sm:$0xf] %vm1104_vm2, %v1336_v31  ;;  %v1368_v35 = vpack.c.bf16 %v847_v33, %v847_v33  ;;  %v813_v37 = vsel %vm678_vm5, %v509_v16, %v749_v32 }
 0x124   :  { %v1334_v38 = vpack.c.bf16 %v813_v37, %v813_v37  ;;  %v845_v39 = vsel %vm710_vm6, %v637_v17, %v781_v34 }
 0x125   :  { %1168 = vst.msk [vmem:[%s2016_s3 + $0xfc] sm:$0xf] %vm1104_vm2, %v1368_v35  ;;  %v1366_v40 = vpack.c.bf16 %v845_v39, %v845_v39 }
 0x126   :  { %1134 = vst.msk [vmem:[%s2016_s3 + $0x74] sm:$0xf] %vm1104_vm2, %v1334_v38 }
 0x127   :  { %1166 = vst.msk [vmem:[%s2016_s3 + $0xf4] sm:$0xf] %vm1104_vm2, %v1366_v40 }

</bundles_post_ra>
